<compile_context>
chip_gen: v5e
topology: v5e:2x2
jax: 0.10.0
libtpu: 0.0.40
codegen_flags: <defaults>
</compile_context>

<pallas_src>
import jax
import jax.numpy as jnp
from jax.experimental import pallas as pl
from jax.experimental.pallas import tpu as pltpu

EPS = 1e-5
LANES = 128  # lane granule for the batch axis (batch-on-lanes layout)


def _round_up(n, m):
    return ((n + m - 1) // m) * m


def _mlp_kernel(xT_ref, w1_ref, b1_ref, w2_ref, b2_ref, wo_ref, bo_ref, o_ref):
    xT = xT_ref[...]                                                     # (Din, TB) bf16

    # fc1 (+ folded bn1) + relu : bf16 MXU matmul, f32 accumulate, f32 epilogue
    h1 = jnp.dot(w1_ref[...], xT, preferred_element_type=jnp.float32) + b1_ref[...]
    h1 = jnp.maximum(h1, 0.0)                                            # (H1, TB) f32
    # dropout: identity in eval mode

    # fc2 (+ folded bn2) + relu
    h2 = jnp.dot(w2_ref[...], h1.astype(jnp.bfloat16),
                 preferred_element_type=jnp.float32) + b2_ref[...]
    h2 = jnp.maximum(h2, 0.0)                                            # (H2, TB) f32
    # dropout: identity in eval mode

    # fc_out: N=1 head -> VPU multiply + sublane (XLU) reduce; lane-dense (1, TB) output row.
    o_ref[...] = jnp.sum(h2 * wo_ref[...], axis=0, keepdims=True) + bo_ref[...]


def fold_bn_params(params, *, compute_dtype=jnp.bfloat16):
    """Fold eval-mode BatchNorm into the Linear weights/biases (exact for inference).

    Weights stay in PyTorch (out_features, in_features) layout for the batch-on-lanes matmuls;
    matmul operands are cast to `compute_dtype` (bf16), biases / head stay f32.
    """
    (w1, b1, g1, be1, m1, v1,
     w2, b2, g2, be2, m2, v2,
     wo, bo) = params

    s1 = g1 * jax.lax.rsqrt(v1 + EPS)                              # (H1,)
    w1f = (w1 * s1[:, None]).astype(compute_dtype)                 # (H1, Din) bf16
    b1f = (((b1 - m1) * s1 + be1)[:, None]).astype(jnp.float32)    # (H1, 1)  f32 column

    s2 = g2 * jax.lax.rsqrt(v2 + EPS)                              # (H2,)
    w2f = (w2 * s2[:, None]).astype(compute_dtype)                 # (H2, H1) bf16
    b2f = (((b2 - m2) * s2 + be2)[:, None]).astype(jnp.float32)    # (H2, 1)  f32 column

    wo_col = wo.reshape(-1, 1).astype(jnp.float32)                 # (H2, 1)  f32 (precision-critical head)
    bo_ = bo.reshape(1, 1).astype(jnp.float32)                     # (1, 1)
    return w1f, b1f, w2f, b2f, wo_col, bo_


def sarcasm_forward(x, params, *, tb=2048):
    """Fused eval-mode MLP forward.

    x: (B, Din) f32. Batch is tiled on the 128-lane axis; weights stay VMEM-resident.
    """
    B, din = x.shape
    w1f, b1f, w2f, b2f, wo_col, bo = fold_bn_params(params)
    h1 = w1f.shape[0]
    h2 = w2f.shape[0]

    # --- Batch tiling ---------------------------------------------------------------
    # TB is a multiple of 128 (lane granule), capped at `tb`. When there is more than one
    # lane-tile of real work, force >= 2 grid steps so both v7x TensorCores get a share.
    Bmin = _round_up(B, LANES)
    tb_cap = max(LANES, _round_up(tb, LANES))
    nsteps = pl.cdiv(Bmin, tb_cap)
    if Bmin > LANES:
        nsteps = max(nsteps, 2)
    TB = _round_up(pl.cdiv(Bmin, nsteps), LANES)
    Bp = TB * nsteps
    grid = (Bp // TB,)

    # Batch-on-lanes: transpose + bf16 cast on the host (halves x HBM/DMA traffic).
    xT = x.T.astype(jnp.bfloat16)                                  # (Din, B)
    if Bp != B:
        # Padded columns produce garbage outputs (b1f generally nonzero); they are sliced off
        # below and nothing inside the kernel reduces over the batch axis.
        xT = jnp.pad(xT, ((0, 0), (0, Bp - B)))

    resident = lambda i: (0, 0)   # weights/biases: same block every step -> stay in VMEM

    # Advisory cost hint so XLA can overlap this kernel with surrounding ops.
    flops = 2 * Bp * (din * h1 + h1 * h2 + h2)
    bytes_accessed = (din * Bp * 2                     # x (bf16)
                      + (h1 * din + h2 * h1) * 2       # folded weights (bf16)
                      + (h1 + h2 + h2 + 1) * 4         # biases / head (f32)
                      + Bp * 4)                        # output (f32)
    cost = pl.CostEstimate(flops=flops, transcendentals=0, bytes_accessed=bytes_accessed)

    out = pl.pallas_call(
        _mlp_kernel,
        out_shape=jax.ShapeDtypeStruct((1, Bp), jnp.float32),
        grid=grid,
        in_specs=[
            pl.BlockSpec((din, TB), lambda i: (0, i)),   # x^T: batch on lanes, pipelined
            pl.BlockSpec((h1, din), resident),           # W1' (bf16)
            pl.BlockSpec((h1, 1), resident),             # b1' (f32 column)
            pl.BlockSpec((h2, h1), resident),            # W2' (bf16)
            pl.BlockSpec((h2, 1), resident),             # b2' (f32 column)
            pl.BlockSpec((h2, 1), resident),             # wo  (f32 column)
            pl.BlockSpec((1, 1), resident),              # bo
        ],
        out_specs=pl.BlockSpec((1, TB), lambda i: (0, i)),   # lane-dense output row
        compiler_params=pltpu.CompilerParams(
            dimension_semantics=("parallel",),            # megacore sharding on v7x
        ),
        cost_estimate=cost,
    )(xT, w1f, b1f, w2f, b2f, wo_col, bo)

    return out[0, :B, None]                               # (B, 1)


def init_params(key, input_dim, hidden_dim=128, hidden_dim2=64):
    """Deterministic parameters matching the PyTorch module's shapes (PyTorch (out, in) layout)."""
    ks = jax.random.split(key, 8)

    def lin(kw, fan_in, fan_out):
        bound = 1.0 / jnp.sqrt(fan_in)
        kw1, kw2 = jax.random.split(kw)
        w = jax.random.uniform(kw1, (fan_out, fan_in), jnp.float32, -bound, bound)
        b = jax.random.uniform(kw2, (fan_out,), jnp.float32, -bound, bound)
        return w, b

    w1, b1 = lin(ks[0], input_dim, hidden_dim)
    w2, b2 = lin(ks[1], hidden_dim, hidden_dim2)
    wo, bo = lin(ks[2], hidden_dim2, 1)

    # BatchNorm1d parameters + running stats (deterministic, non-trivial values).
    g1 = 1.0 + 0.1 * jax.random.normal(ks[3], (hidden_dim,), jnp.float32)
    be1 = 0.1 * jax.random.normal(ks[4], (hidden_dim,), jnp.float32)
    m1 = 0.05 * jax.random.normal(ks[5], (hidden_dim,), jnp.float32)
    v1 = 1.0 + 0.1 * jnp.abs(jax.random.normal(ks[6], (hidden_dim,), jnp.float32))

    g2 = 1.0 + 0.1 * jax.random.normal(ks[7], (hidden_dim2,), jnp.float32)
    be2 = 0.1 * jnp.cos(jnp.arange(hidden_dim2, dtype=jnp.float32))
    m2 = 0.05 * jnp.sin(jnp.arange(hidden_dim2, dtype=jnp.float32))
    v2 = 1.0 + 0.01 * jnp.arange(hidden_dim2, dtype=jnp.float32)

    return (w1, b1, g1, be1, m1, v1,
            w2, b2, g2, be2, m2, v2,
            wo, bo)


def reference_forward(x, params):
    """Pure-JAX f32 reference with explicit (unfolded) BatchNorm, eval-mode semantics."""
    (w1, b1, g1, be1, m1, v1,
     w2, b2, g2, be2, m2, v2,
     wo, bo) = params
    h = x @ w1.T + b1
    h = (h - m1) * (g1 / jnp.sqrt(v1 + EPS)) + be1
    h = jnp.maximum(h, 0.0)
    h = h @ w2.T + b2
    h = (h - m2) * (g2 / jnp.sqrt(v2 + EPS)) + be2
    h = jnp.maximum(h, 0.0)
    return h @ wo.T + bo


def reference_forward_folded(x, params):
    """Pure-JAX reference using the SAME folded bf16 weights / f32 accumulation as the kernel."""
    w1f, b1f, w2f, b2f, wo_col, bo = fold_bn_params(params)
    xT = x.T.astype(jnp.bfloat16)
    h1 = jnp.maximum(jnp.dot(w1f, xT, preferred_element_type=jnp.float32) + b1f, 0.0)
    h2 = jnp.maximum(jnp.dot(w2f, h1.astype(jnp.bfloat16),
                             preferred_element_type=jnp.float32) + b2f, 0.0)
    o = jnp.sum(h2 * wo_col, axis=0, keepdims=True) + bo
    return o.T


if __name__ == "__main__":
    key = jax.random.PRNGKey(0)
    kx, kp = jax.random.split(key)

    batch, input_dim = 160, 32          # small shapes; batch > 128 exercises the 2-step grid path
    x = jax.random.normal(kx, (batch, input_dim), jnp.float32)
    params = init_params(kp, input_dim, hidden_dim=128, hidden_dim2=64)

    out = sarcasm_forward(x, params)
    out = jax.block_until_ready(out)
    assert out.shape == (batch, 1)

    # Tight check against a matched bf16-folded reference, loose check against the f32 reference
    # (bf16 operands make an exact f32 match impossible by construction).
    ref_matched = reference_forward_folded(x, params)
    ref_f32 = reference_forward(x, params)
    assert jnp.allclose(out, ref_matched, atol=2e-3, rtol=2e-3), (out[:4], ref_matched[:4])
    assert jnp.allclose(out, ref_f32, atol=5e-2, rtol=5e-2), (out[:4], ref_f32[:4])

    print("KERNEL_OK")
</pallas_src>

<mosaic_0001>
module attributes {stable_mosaic.version = 11 : i64} {
  func.func @_mlp_kernel(%arg0: i32, %arg1: memref<32x128xbf16, #tpu.memory_space<vmem>>, %arg2: memref<128x32xbf16, #tpu.memory_space<vmem>>, %arg3: memref<128x1xf32, #tpu.memory_space<vmem>>, %arg4: memref<64x128xbf16, #tpu.memory_space<vmem>>, %arg5: memref<64x1xf32, #tpu.memory_space<vmem>>, %arg6: memref<64x1xf32, #tpu.memory_space<vmem>>, %arg7: memref<1x1xf32, #tpu.memory_space<vmem>>, %arg8: memref<1x128xf32, #tpu.memory_space<vmem>>) attributes {dimension_semantics = [#tpu.dimension_semantics<parallel>], iteration_bounds = array<i64: 2>, scalar_prefetch = 0 : i64, scratch_operands = 0 : i64, tpu.core_type = #tpu.core_type<tc>, window_params = [{transform_indices = @transform_0, window_bounds = array<i64: 32, 128>}, {pipeline_mode = #tpu.pipeline_mode<synchronous>, transform_indices = @transform_1, window_bounds = array<i64: 128, 32>}, {pipeline_mode = #tpu.pipeline_mode<synchronous>, transform_indices = @transform_2, window_bounds = array<i64: 128, 1>}, {pipeline_mode = #tpu.pipeline_mode<synchronous>, transform_indices = @transform_3, window_bounds = array<i64: 64, 128>}, {pipeline_mode = #tpu.pipeline_mode<synchronous>, transform_indices = @transform_4, window_bounds = array<i64: 64, 1>}, {pipeline_mode = #tpu.pipeline_mode<synchronous>, transform_indices = @transform_5, window_bounds = array<i64: 64, 1>}, {pipeline_mode = #tpu.pipeline_mode<synchronous>, transform_indices = @transform_6, window_bounds = array<i64: 1, 1>}, {transform_indices = @transform_7, window_bounds = array<i64: 1, 128>}]} {
    %c0 = arith.constant 0 : index
    %c0_0 = arith.constant 0 : index
    %0 = vector.load %arg1[%c0, %c0_0] : memref<32x128xbf16, #tpu.memory_space<vmem>>, vector<32x128xbf16>
    %c0_1 = arith.constant 0 : index
    %c0_2 = arith.constant 0 : index
    %1 = vector.load %arg2[%c0_1, %c0_2] : memref<128x32xbf16, #tpu.memory_space<vmem>>, vector<128x32xbf16>
    %cst = arith.constant dense<0.000000e+00> : vector<128x128xf32>
    %2 = tpu.matmul %1, %0, %cst {dimension_numbers = #tpu.dot_dimension_numbers<[1], [0], [0], [1], [0, 0, 1, 1], [], []>} : vector<128x32xbf16>, vector<32x128xbf16>, vector<128x128xf32> -> vector<128x128xf32>
    %c0_3 = arith.constant 0 : index
    %c0_4 = arith.constant 0 : index
    %3 = vector.load %arg3[%c0_3, %c0_4] : memref<128x1xf32, #tpu.memory_space<vmem>>, vector<128x1xf32>
    %4 = vector.broadcast %3 : vector<128x1xf32> to vector<128x128xf32>
    %5 = arith.addf %2, %4 : vector<128x128xf32>
    %cst_5 = arith.constant 0.000000e+00 : f32
    %6 = vector.broadcast %cst_5 : f32 to vector<128x128xf32>
    %7 = arith.maximumf %5, %6 : vector<128x128xf32>
    %c0_6 = arith.constant 0 : index
    %c0_7 = arith.constant 0 : index
    %8 = vector.load %arg4[%c0_6, %c0_7] : memref<64x128xbf16, #tpu.memory_space<vmem>>, vector<64x128xbf16>
    %9 = arith.truncf %7 : vector<128x128xf32> to vector<128x128xbf16>
    %cst_8 = arith.constant dense<0.000000e+00> : vector<64x128xf32>
    %10 = tpu.matmul %8, %9, %cst_8 {dimension_numbers = #tpu.dot_dimension_numbers<[1], [0], [0], [1], [0, 0, 1, 1], [], []>} : vector<64x128xbf16>, vector<128x128xbf16>, vector<64x128xf32> -> vector<64x128xf32>
    %c0_9 = arith.constant 0 : index
    %c0_10 = arith.constant 0 : index
    %11 = vector.load %arg5[%c0_9, %c0_10] : memref<64x1xf32, #tpu.memory_space<vmem>>, vector<64x1xf32>
    %12 = vector.broadcast %11 : vector<64x1xf32> to vector<64x128xf32>
    %13 = arith.addf %10, %12 : vector<64x128xf32>
    %cst_11 = arith.constant 0.000000e+00 : f32
    %14 = vector.broadcast %cst_11 : f32 to vector<64x128xf32>
    %15 = arith.maximumf %13, %14 : vector<64x128xf32>
    %c0_12 = arith.constant 0 : index
    %c0_13 = arith.constant 0 : index
    %16 = vector.load %arg6[%c0_12, %c0_13] : memref<64x1xf32, #tpu.memory_space<vmem>>, vector<64x1xf32>
    %17 = vector.broadcast %16 : vector<64x1xf32> to vector<64x128xf32>
    %18 = arith.mulf %15, %17 : vector<64x128xf32>
    %cst_14 = arith.constant dense<0.000000e+00> : vector<128xf32>
    %19 = vector.multi_reduction <add>, %18, %cst_14 [0] : vector<64x128xf32> to vector<128xf32>
    %20 = vector.shape_cast %19 : vector<128xf32> to vector<1x128xf32>
    %c0_15 = arith.constant 0 : index
    %c0_16 = arith.constant 0 : index
    %21 = vector.load %arg7[%c0_15, %c0_16] : memref<1x1xf32, #tpu.memory_space<vmem>>, vector<1x1xf32>
    %22 = vector.broadcast %21 : vector<1x1xf32> to vector<1x128xf32>
    %23 = arith.addf %20, %22 : vector<1x128xf32>
    %c0_17 = arith.constant 0 : index
    %c0_18 = arith.constant 0 : index
    %24 = vector.load %arg8[%c0_17, %c0_18] : memref<1x128xf32, #tpu.memory_space<vmem>>, vector<1x128xf32>
    tpu.vector_store %arg8[%c0_17, %c0_18], %23 {strides = array<i32>} : memref<1x128xf32, #tpu.memory_space<vmem>>, vector<1x128xf32>,
    return
  }
  func.func @transform_0(%arg0: i32) -> (i32, i32) {
    %c0_i32 = arith.constant 0 : i32
    %c0_i32_0 = arith.constant 0 : i32
    return %c0_i32, %arg0 : i32, i32
  }
  func.func @transform_1(%arg0: i32) -> (i32, i32) {
    %c0_i32 = arith.constant 0 : i32
    %c0_i32_0 = arith.constant 0 : i32
    %c0_i32_1 = arith.constant 0 : i32
    return %c0_i32, %c0_i32_0 : i32, i32
  }
  func.func @transform_2(%arg0: i32) -> (i32, i32) {
    %c0_i32 = arith.constant 0 : i32
    %c0_i32_0 = arith.constant 0 : i32
    %c0_i32_1 = arith.constant 0 : i32
    return %c0_i32, %c0_i32_0 : i32, i32
  }
  func.func @transform_3(%arg0: i32) -> (i32, i32) {
    %c0_i32 = arith.constant 0 : i32
    %c0_i32_0 = arith.constant 0 : i32
    %c0_i32_1 = arith.constant 0 : i32
    return %c0_i32, %c0_i32_0 : i32, i32
  }
  func.func @transform_4(%arg0: i32) -> (i32, i32) {
    %c0_i32 = arith.constant 0 : i32
    %c0_i32_0 = arith.constant 0 : i32
    %c0_i32_1 = arith.constant 0 : i32
    return %c0_i32, %c0_i32_0 : i32, i32
  }
  func.func @transform_5(%arg0: i32) -> (i32, i32) {
    %c0_i32 = arith.constant 0 : i32
    %c0_i32_0 = arith.constant 0 : i32
    %c0_i32_1 = arith.constant 0 : i32
    return %c0_i32, %c0_i32_0 : i32, i32
  }
  func.func @transform_6(%arg0: i32) -> (i32, i32) {
    %c0_i32 = arith.constant 0 : i32
    %c0_i32_0 = arith.constant 0 : i32
    %c0_i32_1 = arith.constant 0 : i32
    return %c0_i32, %c0_i32_0 : i32, i32
  }
  func.func @transform_7(%arg0: i32) -> (i32, i32) {
    %c0_i32 = arith.constant 0 : i32
    %c0_i32_0 = arith.constant 0 : i32
    return %c0_i32, %arg0 : i32, i32
  }
}

</mosaic_0001>

<bundles_post_ra>
// kernel: tpu_custom_call.1
= control target key start
LH: loop header
LB: loop body
LE: loop exit
PB: predicated region body
PF: predicated region fallthrough
CT: control target
= control target key end

     0   :  { %s1358_s0 = inlined_call_operand.vmem [shape: bf16[32,256], index: 0, kind: input, shape index: {}]   ;;  %s1359_s1 = inlined_call_operand.vmem [shape: bf16[128,32], index: 1, kind: input, shape index: {}]   ;;  %s1360_s2 = inlined_call_operand.vmem [shape: f32[128,1], index: 2, kind: input, shape index: {}]   ;;  %s1361_s3 = inlined_call_operand.vmem [shape: bf16[64,128], index: 3, kind: input, shape index: {}]   ;;  %s1362_s4 = inlined_call_operand.vmem [shape: f32[64,1], index: 4, kind: input, shape index: {}]   ;;  %s1363_s5 = inlined_call_operand.vmem [shape: f32[64,1], index: 5, kind: input, shape index: {}]   ;;  %s1364_s6 = inlined_call_operand.<no memory space> [shape: f32[1,1], index: 6, kind: input, shape index: {}]   ;;  %s1365_s7 = inlined_call_operand.hbm [shape: f32[1,256], index: 7, kind: output, shape index: {}]  }
   0x1   :  { %v12_v0 = vstv %s1364_s6 }
   0x2   :  { %13 = vst [vmem:[#allocation2] sm:$0x1] %v12_v0 }
   0x3   :  { %14 = vsyncpa [#allocation5], 0 }
   0x4   :  { %16 = vsyncpa [#allocation5 + $0x1], 0  ;;  %s1117_s26 = smov 0   ;;  %s1119_s27 = smov 0  }
   0x5   :  { %s1121_s28 = smov 0   ;;  %s1123_s29 = smov 0  }
   0x6 LB: > { %s868_s6 = sadd.s32 4294967295, %s1071_s29   ;;  %s869_s30 = sadd.s32 4294967294, %s1071_s29   ;;  %s1071_s29 = sphi %s1123_s29, %s1371_s29   ;;  %s1067_s28 = sphi %s1121_s28, %s1370_s28   ;;  %s1063_s27 = sphi %s1119_s27, %s1369_s27   ;;  %s1059_s26 = sphi %s1117_s26, %s1368_s26  }
   0x7   : > { %s1140_s8 = sadd.s32 1, %s1071_s29   ;;  %s29_s9 = sadd.s32 1, %s1067_s28 }
   0x8   : > { %s26_s10 = ssub.s32 %s1071_s29, %s1140_s8  ;;  %p36_p0 = scmp.ne.s32.totalorder %s1067_s28, %s1063_s27 }
   0x9   : > { %p27_p1 = scmp.eq.s32.totalorder %s26_s10, 0  ;;  %p37_p2 = scmp.eq.s32.totalorder %s1071_s29, 0 }
   0xa   : > { %p192_p3 = scmp.eq.s32.totalorder %s868_s6, 1  ;;  %p197_p4 = scmp.ne.s32.totalorder %s1063_s27, %s1059_s26 }
   0xb   : > { %s1153_s11 = scalar_select %p27_p1, %s1067_s28, %s29_s9  }
   0xc   : > { %p38_p5 = por %p37_p2, %p36_p0  ;;  %p1155_p6 = por %p192_p3, %p36_p0 }
   0xd   : > { %p198_p7 = scmp.eq.s32.totalorder %s869_s30, 1  ;;  %p871_p9 = scmp.ge.s32.totalorder %s1071_s29, 2 }
   0xf   : > { %p1159_p8 = por %p198_p7, %p197_p4  ;;  %232 = sbr.rel (%p871_p9) target bundleno = 28 (0x1c), region = 40 }
  0x14   : > { %235 = sbr.rel (!%p38_p5) target bundleno = 28 (0x1c), region = 44  ;;  %s237_s14 = sand.u32 (%p38_p5), 1, %s1067_s28  }
  0x15   : > { %s873_s15 = sshll.u32 (%p38_p5), %s1071_s29, 2  ;;  %s872_s16 = sshll.u32 (%p38_p5), %s237_s14, 4 }
  0x16   : > { %s241_s19 = scalar_lea.vmem (%p38_p5), %s1358_s0, %s873_s15  ;;  %s239_s20 = scalar_lea.vmem (%p38_p5), [#allocation3], %s872_s16 }
  0x17   : > { %v258_v1 = vld [vmem:[%s241_s19] sm:$0xf] (%p38_p5)  ;;  %v260_v2 = vld [vmem:[%s241_s19 + $0x8] sm:$0xf] (%p38_p5)  ;;  %v262_v3 = vld [vmem:[%s241_s19 + $0x10] sm:$0xf] (%p38_p5) }
  0x18   : > { %259 = vst [vmem:[%s239_s20] sm:$0xf] (%p38_p5), %v258_v1  ;;  %v264_v4 = vld [vmem:[%s241_s19 + $0x18] sm:$0xf] (%p38_p5) }
  0x19   : > { %261 = vst [vmem:[%s239_s20 + $0x4] sm:$0xf] %v260_v2 }
  0x1a   : > { %263 = vst [vmem:[%s239_s20 + $0x8] sm:$0xf] %v262_v3 }
  0x1b   : > { %265 = vst [vmem:[%s239_s20 + $0xc] sm:$0xf] %v264_v4 }
  0x1c PF: > { %p874_p10 = scmp.ge.s32.totalorder %s1071_s29, 1  ;;  %p296_p11 = scmp.lt.s32.totalorder %s1071_s29, 3 }
  0x1e   : > { %p297_p12 = pnand %p874_p10, %p296_p11 }
  0x1f   : > { %s1180_s25 = sand.u32 (!%p297_p12), 1, %s1063_s27   ;;  %s804_s15 = scalar_lea.hbm (!%p297_p12), %s1365_s7, %s868_s6 }
  0x20   : > { %300 = sbr.rel (%p297_p12) target bundleno = 470 (0x1d6), region = 85  ;;  %s875_s30 = sshll.u32 (!%p297_p12), %s1180_s25, 4 }
  0x21   : > { %s305_s14 = scalar_lea.vmem (!%p297_p12), [#allocation3], %s875_s30  ;;  %s332_s16 = scalar_lea.vmem (!%p297_p12), [#allocation4], %s1180_s25 }
  0x22   : > { %s806_s17 = sshll.u32 (!%p297_p12), %s332_s16, 4  ;;  %s808_s18 = sshll.u32 (!%p297_p12), %s804_s15, 4  ;;  %s807_s17 = int_to_ptr.vmem [resolvable:$true] %s806_s17  ;;  %s809_s18 = int_to_ptr.hbm [resolvable:$true] %s808_s18 }
  0x23   : > { %s796_s19 = scalar_lea.sflag (!%p297_p12), [#allocation5], %s1180_s25  ;;  %s1023_s20 = sshra.s32 (!%p297_p12), %s809_s18, 4  ;;  %s1024_s20 = int_to_ptr.hbm [resolvable:$true] %s1023_s20 }
  0x24   : > { %s1025_s21 = scalar_lea.hbm (!%p297_p12), %s1024_s20, 1  ;;  %s1029_s23 = scalar_lea.hbm (!%p297_p12), %s1365_s7, 2 }
  0x25   : > { %v368_v5 = vld [vmem:[%s1360_s2 + $0x70] sm:$0xff]  ;;  %v366_v6 = vld [vmem:[%s1360_s2 + $0x60] sm:$0xff]  ;;  %v1073_v7 = vmov 0   ;;  %v369_v11 = vld [vmem:[%s1360_s2 + $0x78] sm:$0xff]  ;;  %vm502_vm0 = vcmask 261120   ;;  %p1026_p13 = scmp.ne.s32.totalorder %s1024_s20, %s1025_s21  ;;  %p1030_p2 = scmp.lt.s32.totalorder %s1024_s20, %s1365_s7 }
  0x26   : > { %1007 = vset.pattern.permute.xlu1 %v1073_v7  ;;  %1006 = vset.pattern.permute.xlu0 %v1073_v7  ;;  %v364_v8 = vld [vmem:[%s1360_s2 + $0x50] sm:$0xff]  ;;  %v367_v12 = vld [vmem:[%s1360_s2 + $0x68] sm:$0xff]  ;;  %v944_v13 = vld [vmem:[%s1359_s1] sm:$0xff]  ;;  %p1031_p3 = scmp.lt.s32.totalorder %s1029_s23, %s1025_s21 }
  0x27   : > { %442 = vperm.xlu0 %1006, %v368_v5   ;;  %432 = vperm.xlu1 %1007, %v366_v6   ;;  %v943_v9 = vld [vmem:[%s305_s14 + $0x8] sm:$0xff]  ;;  %v942_v10 = vld [vmem:[%s305_s14] sm:$0xff]  ;;  %p1027_p0 = pnand %p1026_p13, %p1155_p6 }
  0x28   : > { %1008 = vset.pattern.permute.xlu2 %v1073_v7  ;;  %533 = vmatpush.bf16.msra.mxu0 %v943_v9  ;;  %v948_v14 = vld [vmem:[%s1359_s1 + $0x20] sm:$0xff]  ;;  %v365_v15 = vld [vmem:[%s1360_s2 + $0x58] sm:$0xff]  ;;  %v363_v16 = vld [vmem:[%s1360_s2 + $0x48] sm:$0xff]  ;;  %p1032_p4 = por %p1031_p3, %p1030_p2 }
  0x29   : > { %422 = vperm.xlu2 %1008, %v364_v8   ;;  %956 = vmatpush.bf16.msra.mxu2 %v943_v9  ;;  %v362_v17 = vld [vmem:[%s1360_s2 + $0x40] sm:$0xff]  ;;  %v360_v18 = vld [vmem:[%s1360_s2 + $0x30] sm:$0xff]  ;;  %v361_v19 = vld [vmem:[%s1360_s2 + $0x38] sm:$0xff]  ;;  %p1028_p1 = pneg %p1027_p0 }
  0x2a   : > { %v358_v20 = vld [vmem:[%s1360_s2 + $0x20] sm:$0xff]  ;;  %v945_v21 = vld [vmem:[%s1359_s1 + $0x8] sm:$0xff]  ;;  %v357_v24 = vld [vmem:[%s1360_s2 + $0x18] sm:$0xff] }
  0x2b   : > { %v949_v22 = vld [vmem:[%s1359_s1 + $0x28] sm:$0xff]  ;;  %v356_v25 = vld [vmem:[%s1360_s2 + $0x10] sm:$0xff]  ;;  %v354_v26 = vld [vmem:[%s1360_s2] sm:$0xff]  ;;  %p1033_p5 = pnand %p1032_p4, %p1028_p1 }
  0x2c   : > { %534 = vmatpush.bf16.msra.mxu0 %v942_v10  ;;  %v359_v23 = vld [vmem:[%s1360_s2 + $0x28] sm:$0xff]  ;;  %v608_v27 = vld [vmem:[%s1362_s4] sm:$0xff]  ;;  %v946_v29 = vld [vmem:[%s1359_s1 + $0x10] sm:$0xff] }
  0x2d   : > { %957 = vmatpush.bf16.msra.mxu2 %v942_v10  ;;  %v355_v28 = vld [vmem:[%s1360_s2 + $0x8] sm:$0xff]  ;;  %v950_v30 = vld [vmem:[%s1359_s1 + $0x30] sm:$0xff]  ;;  %v611_v32 = vld [vmem:[%s1362_s4 + $0x18] sm:$0xff] }
  0x2e   : > { %v609_v31 = vld [vmem:[%s1362_s4 + $0x8] sm:$0xff]  ;;  %v610_v33 = vld [vmem:[%s1362_s4 + $0x10] sm:$0xff]  ;;  %v612_v34 = vld [vmem:[%s1362_s4 + $0x20] sm:$0xff] }
  0x2f   : > { %447 = vperm.xlu0 %1006, %v369_v11   ;;  %437 = vperm.xlu1 %1007, %v367_v12   ;;  %v717_v35 = vld [vmem:[%s1363_s5] sm:$0xff]  ;;  %v613_v36 = vld [vmem:[%s1362_s4 + $0x28] sm:$0xff]  ;;  %v947_v37 = vld [vmem:[%s1359_s1 + $0x18] sm:$0xff] }
  0x30   : > { %916 = vmatmul.msk.bf16.vlgmr.msra.gmra.mxu0 %vm502_vm0, %v944_v13  ;;  %920 = vmatmul.msk.bf16.vlgmr.msra.gmra.mxu2 %vm502_vm0, %v948_v14  ;;  %v951_v38 = vld [vmem:[%s1359_s1 + $0x38] sm:$0xff]  ;;  %v718_v39 = vld [vmem:[%s1363_s5 + $0x8] sm:$0xff]  ;;  %v719_v41 = vld [vmem:[%s1363_s5 + $0x10] sm:$0xff] }
  0x31   : > { %427 = vperm.xlu2 %1008, %v365_v15   ;;  %v720_v40 = vld [vmem:[%s1363_s5 + $0x18] sm:$0xff]  ;;  %v614_v42 = vld [vmem:[%s1362_s4 + $0x30] sm:$0xff]  ;;  %v721_v44 = vld [vmem:[%s1363_s5 + $0x20] sm:$0xff] }
  0x32   : > { %v615_v43 = vld [vmem:[%s1362_s4 + $0x38] sm:$0xff]  ;;  %v722_v45 = vld [vmem:[%s1363_s5 + $0x28] sm:$0xff]  ;;  %v723_v47 = vld [vmem:[%s1363_s5 + $0x30] sm:$0xff] }
  0x33   : > { %v724_v46 = vld [vmem:[%s1363_s5 + $0x38] sm:$0xff]  ;;  %v786_v48 = vld [vmem:[#allocation2] sm:$0x1] }
  0x37   : > { %417 = vperm.xlu1 %1007, %v363_v16   ;;  %412 = vperm.xlu0 %1006, %v362_v17  }
  0x39   : > { %402 = vperm.xlu2 %1008, %v360_v18  }
  0x3f   : > { %407 = vperm.xlu0 %1006, %v361_v19   ;;  %392 = vperm.xlu1 %1007, %v358_v20  }
  0x40   : > { %917 = vmatmul.msk.bf16.gmra.mxu0 %vm502_vm0, %v945_v21  ;;  %921 = vmatmul.msk.bf16.gmra.mxu2 %vm502_vm0, %v949_v22 }
  0x41   : > { %397 = vperm.xlu2 %1008, %v359_v23  }
  0x47   : > { %387 = vperm.xlu1 %1007, %v357_v24   ;;  %382 = vperm.xlu0 %1006, %v356_v25  }
  0x49   : > { %372 = vperm.xlu2 %1008, %v354_v26  }
  0x4f   : > { %618 = vperm.xlu1 %1007, %v608_v27   ;;  %377 = vperm.xlu0 %1006, %v355_v28  }
  0x50   : > { %918 = vmatmul.msk.bf16.gmra.mxu0 %vm502_vm0, %v946_v29  ;;  %922 = vmatmul.msk.bf16.gmra.mxu2 %vm502_vm0, %v950_v30 }
  0x51   : > { %623 = vperm.xlu2 %1008, %v609_v31  }
  0x57   : > { %633 = vperm.xlu1 %1007, %v611_v32   ;;  %628 = vperm.xlu0 %1006, %v610_v33  }
  0x59   : > { %638 = vperm.xlu2 %1008, %v612_v34  }
  0x5f   : > { %727 = vperm.xlu1 %1007, %v717_v35   ;;  %643 = vperm.xlu0 %1006, %v613_v36  }
  0x60   : > { %919 = vmatmul.msk.bf16.gmra.mxu0 %vm502_vm0, %v947_v37  ;;  %923 = vmatmul.msk.bf16.gmra.mxu2 %vm502_vm0, %v951_v38 }
  0x61   : > { %732 = vperm.xlu2 %1008, %v718_v39  }
  0x67   : > { %742 = vperm.xlu1 %1007, %v720_v40   ;;  %737 = vperm.xlu0 %1006, %v719_v41  }
  0x69   : > { %648 = vperm.xlu2 %1008, %v614_v42  }
  0x6f   : > { %653 = vperm.xlu1 %1007, %v615_v43   ;;  %747 = vperm.xlu0 %1006, %v721_v44  }
  0x71   : > { %752 = vperm.xlu2 %1008, %v722_v45  }
  0x77   : > { %762 = vperm.xlu1 %1007, %v724_v46   ;;  %757 = vperm.xlu0 %1006, %v723_v47  }
  0x79   : > { %789 = vperm.xlu2 %1008, %v786_v48  }
  0x83   : > { %v423_v61 = vpop.permute.xlu2 %422 }
  0x8b   : > { %v428_v3 = vpop.permute.xlu2 %427 }
  0x93   : > { %v403_v11 = vpop.permute.xlu2 %402 }
  0x99   : > { %v443_v57 = vpop.permute.xlu0 %442  ;;  %v433_v59 = vpop.permute.xlu1 %432 }
  0x9b   : > { %v398_v29 = vpop.permute.xlu2 %397 }
  0xa1   : > { %v448_v62 = vpop.permute.xlu0 %447  ;;  %v438_v0 = vpop.permute.xlu1 %437 }
  0xa3   : > { %v373_v46 = vpop.permute.xlu2 %372 }
  0xa9   : > { %v413_v4 = vpop.permute.xlu0 %412  ;;  %v418_v5 = vpop.permute.xlu1 %417 }
  0xad   : > { %v1305_v49 = vpop.f32.mrf.mxu0 }
  0xae   : > { %v537_v47 = vadd.f32 %v1305_v49, %v373_v46  ;;  %v953_v49 = vld [vmem:[%s1361_s3 + $0x8] sm:$0xff] }
  0xb1   : > { %v408_v15 = vpop.permute.xlu0 %407  ;;  %v393_v24 = vpop.permute.xlu1 %392 }
  0xb3   : > { %v556_v50 = vpop.f32.mrf.mxu2 }
  0xb4   : > { %v557_v25 = vadd.f32 %v556_v50, %v413_v4 }
  0xb5   : > { %v1307_v51 = vpop.f32.mrf.mxu0 }
  0xb6   : > { %v584_v33 = vmax.f32 %v557_v25, 0.0 }
  0xb9   : > { %v383_v34 = vpop.permute.xlu0 %382  ;;  %v388_v40 = vpop.permute.xlu1 %387 }
  0xbb   : > { %v558_v52 = vpop.f32.mrf.mxu2 }
  0xbc   : > { %v559_v21 = vadd.f32 %v558_v52, %v418_v5 }
  0xbd   : > { %v541_v53 = vpop.f32.mrf.mxu0 }
  0xbe   : > { %v585_v28 = vmax.f32 %v559_v21, 0.0  ;;  %v542_v41 = vadd.f32 %v541_v53, %v383_v34 }
  0xc0   : > { %v604_v35 = vpack.c.bf16 %v585_v28, %v584_v33  ;;  %v578_v50 = vmax.f32 %v542_v41, 0.0 }
  0xc1   : > { %v378_v48 = vpop.permute.xlu0 %377 }
  0xc2   : > { %v539_v52 = vadd.f32 %v1307_v51, %v378_v48  ;;  %v954_v51 = vld [vmem:[%s1361_s3 + $0x10] sm:$0xff] }
  0xc3   : > { %v561_v54 = vpop.f32.mrf.mxu2 }
  0xc4   : > { %v562_v19 = vadd.f32 %v561_v54, %v423_v61  ;;  %v619_v61 = vpop.permute.xlu1 %618 }
  0xc5   : > { %v543_v56 = vpop.f32.mrf.mxu0 }
  0xc6   : > { %v586_v27 = vmax.f32 %v562_v19, 0.0  ;;  %v544_v42 = vadd.f32 %v543_v56, %v388_v40 }
  0xc8   : > { %v579_v54 = vmax.f32 %v544_v42, 0.0 }
  0xca   : > { %v601_v53 = vpack.c.bf16 %v579_v54, %v578_v50 }
  0xcb   : > { %v563_v55 = vpop.f32.mrf.mxu2 }
  0xcc   : > { %v564_v16 = vadd.f32 %v563_v55, %v428_v3 }
  0xcd   : > { %v546_v60 = vpop.f32.mrf.mxu0 }
  0xce   : > { %v587_v22 = vmax.f32 %v564_v16, 0.0  ;;  %v547_v36 = vadd.f32 %v546_v60, %v393_v24  ;;  %v955_v60 = vld [vmem:[%s1361_s3 + $0x18] sm:$0xff] }
  0xd0   : > { %v605_v32 = vpack.c.bf16 %v587_v22, %v586_v27  ;;  %v580_v43 = vmax.f32 %v547_v36, 0.0 }
  0xd3   : > { %v566_v58 = vpop.f32.mrf.mxu2 }
  0xd4   : > { %v567_v12 = vadd.f32 %v566_v58, %v433_v59  ;;  %v577_v58 = vmax.f32 %v539_v52, 0.0  ;;  %v952_v59 = vld [vmem:[%s1361_s3] sm:$0xff] }
  0xd5   : > { %v548_v1 = vpop.f32.mrf.mxu0 }
  0xd6   : > { %v588_v20 = vmax.f32 %v567_v12, 0.0  ;;  %v549_v37 = vadd.f32 %v548_v1, %v398_v29  ;;  %v634_v1 = vpop.permute.xlu1 %633 }
  0xd8   : > { %v581_v44 = vmax.f32 %v549_v37, 0.0 }
  0xda   : > { %v602_v55 = vpack.c.bf16 %v581_v44, %v580_v43 }
  0xdb   : > { %v568_v63 = vpop.f32.mrf.mxu2 }
  0xdc   : > { %v569_v9 = vadd.f32 %v568_v63, %v438_v0  ;;  %v629_v63 = vpop.permute.xlu0 %628 }
  0xdd   : > { %v551_v7 = vpop.f32.mrf.mxu0 }
  0xde   : > { %v589_v17 = vmax.f32 %v569_v9, 0.0  ;;  %v552_v30 = vadd.f32 %v551_v7, %v403_v11 }
  0xe0   : > { %v606_v23 = vpack.c.bf16 %v589_v17, %v588_v20  ;;  %v582_v38 = vmax.f32 %v552_v30, 0.0 }
  0xe3   : > { %v571_v2 = vpop.f32.mrf.mxu2 }
  0xe4   : > { %v572_v6 = vadd.f32 %v571_v2, %v443_v57  ;;  %v576_v57 = vmax.f32 %v537_v47, 0.0  ;;  %v644_v5 = vpop.permute.xlu0 %643 }
  0xe5   : > { %v553_v26 = vpop.f32.mrf.mxu0 }
  0xe6   : > { %v590_v13 = vmax.f32 %v572_v6, 0.0  ;;  %v554_v31 = vadd.f32 %v553_v26, %v408_v15  ;;  %v600_v56 = vpack.c.bf16 %v577_v58, %v576_v57  ;;  %v728_v6 = vpop.permute.xlu1 %727 }
  0xe8   : > { %v583_v39 = vmax.f32 %v554_v31, 0.0 }
  0xea   : > { %v603_v45 = vpack.c.bf16 %v583_v39, %v582_v38 }
  0xeb   : > { %v573_v8 = vpop.f32.mrf.mxu2 }
  0xec   : > { %v574_v10 = vadd.f32 %v573_v8, %v448_v62  ;;  %v624_v62 = vpop.permute.xlu2 %623 }
  0xee   : > { %v591_v14 = vmax.f32 %v574_v10, 0.0  ;;  %v738_v10 = vpop.permute.xlu0 %737 }
  0xf0   : > { %v607_v18 = vpack.c.bf16 %v591_v14, %v590_v13  ;;  %v743_v13 = vpop.permute.xlu1 %742 }
  0xf2   : > { %680 = vmatpush.bf16.msra.mxu1 %v607_v18  ;;  %958 = vmatpush.bf16.msra.mxu3 %v607_v18 }
  0xf4   : > { %v639_v2 = vpop.permute.xlu2 %638 }
  0xf6   : > { %681 = vmatpush.bf16.msra.mxu1 %v606_v23  ;;  %959 = vmatpush.bf16.msra.mxu3 %v606_v23  ;;  %v748_v22 = vpop.permute.xlu0 %747 }
  0xf8   : > { %v654_v31 = vpop.permute.xlu1 %653 }
  0xfa   : > { %682 = vmatpush.bf16.msra.mxu1 %v605_v32  ;;  %960 = vmatpush.bf16.msra.mxu3 %v605_v32 }
  0xfc   : > { %v733_v8 = vpop.permute.xlu2 %732 }
  0xfe   : > { %683 = vmatpush.bf16.msra.mxu1 %v604_v35  ;;  %961 = vmatpush.bf16.msra.mxu3 %v604_v35  ;;  %v758_v41 = vpop.permute.xlu0 %757 }
 0x100   : > { %v763_v48 = vpop.permute.xlu1 %762 }
 0x102   : > { %684 = vmatpush.bf16.msra.mxu1 %v603_v45  ;;  %962 = vmatpush.bf16.msra.mxu3 %v603_v45 }
 0x104   : > { %v649_v19 = vpop.permute.xlu2 %648 }
 0x106   : > { %685 = vmatpush.bf16.msra.mxu1 %v602_v55  ;;  %963 = vmatpush.bf16.msra.mxu3 %v602_v55 }
 0x10a   : > { %686 = vmatpush.bf16.msra.mxu1 %v601_v53  ;;  %964 = vmatpush.bf16.msra.mxu3 %v601_v53 }
 0x10c   : > { %v753_v38 = vpop.permute.xlu2 %752 }
 0x10e   : > { %687 = vmatpush.bf16.msra.mxu1 %v600_v56  ;;  %965 = vmatpush.bf16.msra.mxu3 %v600_v56 }
 0x111   : > { %688 = vmatmul.bf16.vlgmr.msra.gmra.mxu1 %v952_v59  ;;  %693 = vmatmul.bf16.vlgmr.msra.gmra.mxu3 %v953_v49 }
 0x114   : > { %v790_v56 = vpop.permute.xlu2 %789 }
 0x115   : > { %v792_v49 = vperm.slane %v790_v56, 0 }
 0x121   : > { %698 = vmatmul.bf16.gmra.mxu3 %v954_v51 }
 0x131   : > { %703 = vmatmul.bf16.gmra.mxu3 %v955_v60 }
 0x18e   : > { %v689_v3 = vpop.f32.mrf.mxu1 }
 0x18f   : > { %v690_v12 = vadd.f32 %v689_v3, %v619_v61 }
 0x191   : > { %v709_v16 = vmax.f32 %v690_v12, 0.0 }
 0x193   : > { %v765_v23 = vmul.f32 %v728_v6, %v709_v16 }
 0x194   : > { %v694_v0 = vpop.f32.mrf.mxu3 }
 0x195   : > { %v695_v17 = vadd.f32 %v694_v0, %v629_v63 }
 0x196   : > { %v691_v9 = vpop.f32.mrf.mxu1 }
 0x197   : > { %v692_v11 = vadd.f32 %v691_v9, %v624_v62  ;;  %v711_v24 = vmax.f32 %v695_v17, 0.0 }
 0x199   : > { %v710_v15 = vmax.f32 %v692_v11, 0.0  ;;  %v767_v32 = vmul.f32 %v738_v10, %v711_v24 }
 0x19b   : > { %v766_v20 = vmul.f32 %v733_v8, %v710_v15 }
 0x19c   : > { %v696_v4 = vpop.f32.mrf.mxu3 }
 0x19d   : > { %v697_v18 = vadd.f32 %v696_v4, %v634_v1  ;;  %v773_v28 = vadd.f32 %v766_v20, %v765_v23 }
 0x19f   : > { %v712_v25 = vmax.f32 %v697_v18, 0.0  ;;  %v774_v35 = vadd.f32 %v773_v28, %v767_v32 }
 0x1a1   : > { %v768_v33 = vmul.f32 %v743_v13, %v712_v25 }
 0x1a3   : > { %v775_v39 = vadd.f32 %v774_v35, %v768_v33 }
 0x1a4   : > { %v699_v7 = vpop.f32.mrf.mxu3 }
 0x1a5   : > { %v700_v21 = vadd.f32 %v699_v7, %v639_v2 }
 0x1a7   : > { %v713_v29 = vmax.f32 %v700_v21, 0.0 }
 0x1a9   : > { %v769_v36 = vmul.f32 %v748_v22, %v713_v29 }
 0x1ab   : > { %v776_v43 = vadd.f32 %v775_v39, %v769_v36 }
 0x1ac   : > { %v701_v14 = vpop.f32.mrf.mxu3 }
 0x1ad   : > { %v702_v26 = vadd.f32 %v701_v14, %v644_v5 }
 0x1af   : > { %v714_v34 = vmax.f32 %v702_v26, 0.0 }
 0x1b1   : > { %v770_v40 = vmul.f32 %v753_v38, %v714_v34 }
 0x1b3   : > { %v777_v46 = vadd.f32 %v776_v43, %v770_v40 }
 0x1b4   : > { %v704_v27 = vpop.f32.mrf.mxu3 }
 0x1b5   : > { %v705_v30 = vadd.f32 %v704_v27, %v649_v19 }
 0x1b7   : > { %v715_v37 = vmax.f32 %v705_v30, 0.0 }
 0x1b9   : > { %v771_v44 = vmul.f32 %v758_v41, %v715_v37 }
 0x1bb   : > { %v778_v50 = vadd.f32 %v777_v46, %v771_v44 }
 0x1bc   : > { %v706_v42 = vpop.f32.mrf.mxu3 }
 0x1bd   : > { %v707_v45 = vadd.f32 %v706_v42, %v654_v31 }
 0x1bf   : > { %v716_v47 = vmax.f32 %v707_v45, 0.0 }
 0x1c1   : > { %v772_v52 = vmul.f32 %v763_v48, %v716_v47 }
 0x1c3   : > { %v779_v54 = vadd.f32 %v778_v50, %v772_v52 }
 0x1c5   : > { %v780_v55 = vrot.slane %v779_v54, 4 }
 0x1c7   : > { %v781_v57 = vadd.f32 %v780_v55, %v779_v54 }
 0x1c9   : > { %v782_v58 = vrot.slane %v781_v57, 2 }
 0x1cb   : > { %v783_v53 = vadd.f32 %v782_v58, %v781_v57 }
 0x1cd   : > { %v784_v59 = vrot.slane %v783_v53, 1 }
 0x1cf   : > { %v785_v51 = vadd.f32 %v784_v59, %v783_v53 }
 0x1d1   : > { %v793_v60 = vadd.f32 %v792_v49, %v785_v51 }
 0x1d3   : > { %794 = vst [vmem:[%s332_s16] sm:$0x1] %v793_v60 }
 0x1d4   : > { %1036 = shalt.err (!%p1033_p5)
}
 0x1d5   : > { %966 = dma.vmem_to_hbm [thread:$0]  (%p1155_p6), %s807_s17, 16, %s809_s18, %s796_s19  }
 0x1d6 PF: > { %s820_s25 = sand.u32 1, %s1059_s26   ;;  %p969_p7 = pnand %p871_p9, %p1159_p8 }
 0x1d7   : > { %s821_s9 = scalar_lea.sflag [#allocation5], %s820_s25 }
 0x1d8   : > { %p970_p10 = pneg %p969_p7 }
 0x1da   : > { %1054 = dma.done.wait (%p970_p10), %s821_s9, 16  }
 0x1db   : > { %1056 = vsyncadd (%p970_p10), %s821_s9, 4294967280  ;;  %p19_p11 = scmp.ge.s32.totalorder %s1140_s8, 4   ;;  %s1368_s26 = smov %s1063_s27 }
 0x1dc   : > { %s1369_s27 = smov %s1067_s28  ;;  %s1370_s28 = smov %s1153_s11 }
 0x1dd   : > { %s1371_s29 = smov %s1140_s8  ;;  %21 = sbr.rel (!%p19_p11) target bundleno = 6 (0x6), region = 129 }
 0x1e2   :  { %826 = vsyncpa [#allocation5], 1 }
 0x1e3   :  { %828 = vsyncpa [#allocation5 + $0x1], 1 }

</bundles_post_ra>
